<compile_context>
chip_gen: v6e
topology: v6e:2x2x1
jax: 0.10.0
libtpu: 0.0.40
codegen_flags: <defaults>
</compile_context>

<pallas_src>
import math

import jax
import jax.numpy as jnp
from jax import lax
from jax.experimental import pallas as pl
from jax.experimental.pallas import tpu as pltpu


def _get_slopes(heads: int):
    """Deterministic ALiBi slopes, identical to the PyTorch reference."""

    def get_slopes_power_of_2(n):
        start = 2 ** (-(2 ** (-(math.log2(n) - 3))))
        ratio = start
        return [start * ratio ** i for i in range(n)]

    if math.log2(heads).is_integer():
        return get_slopes_power_of_2(heads)
    closest_power_of_2 = 2 ** math.floor(math.log2(heads))
    return (
        get_slopes_power_of_2(closest_power_of_2)
        + get_slopes_power_of_2(2 * closest_power_of_2)[0::2][: heads - closest_power_of_2]
    )


def _alibi_kernel(slopes_ref, out_ref):
    # slopes_ref: (heads, 1) f32, grid-invariant (resident in VMEM)
    # out_ref:    (heads, tile_j) view of the (heads, 1, j) output (middle dim
    #             squeezed); one lane-dense j-tile per grid step.
    heads, tile_j = out_ref.shape
    base = (pl.program_id(0) * tile_j).astype(jnp.float32)
    pos = lax.broadcasted_iota(jnp.int32, (heads, tile_j), 1).astype(jnp.float32) + base
    out_ref[...] = (slopes_ref[...] * pos).astype(out_ref.dtype)


def _pick_tile_j(heads: int, j: int, vmem_budget_bytes: int) -> int:
    """Lane-dense j-tile: as large as the VMEM byte budget allows, but with at
    least 2 grid steps when j permits (so a "parallel" j axis can shard across
    the two TensorCores on v7x)."""
    if j <= 128:
        # single full block (block_shape == full array dim is always legal)
        return j
    # lanes allowed by the per-buffer byte budget, rounded down to 128
    budget_lanes = max(128, (vmem_budget_bytes // (heads * 4)) // 128 * 128)
    # smallest multiple of 128 that still splits j into >= 2 tiles
    half_lanes = ((-(-j // 2)) + 127) // 128 * 128
    return min(budget_lanes, half_lanes)


def alibi_bias(
    heads: int,
    j: int,
    *,
    out_dtype=jnp.float32,
    vmem_budget_bytes: int = 4 << 20,
) -> jax.Array:
    """Returns the ALiBi bias of shape (heads, 1, j)."""
    # f32 positions are exact only below 2^24 — fine for any realistic seq len.
    assert j < (1 << 24), "j too large for exact f32 positions"

    slopes = jnp.asarray(_get_slopes(heads), dtype=jnp.float32).reshape(heads, 1)

    tj = _pick_tile_j(heads, j, vmem_budget_bytes)
    grid = (pl.cdiv(j, tj),)

    itemsize = jnp.dtype(out_dtype).itemsize
    cost = pl.CostEstimate(
        flops=2 * heads * j,
        transcendentals=0,
        bytes_accessed=heads * j * itemsize + heads * 4,
    )

    return pl.pallas_call(
        _alibi_kernel,
        out_shape=jax.ShapeDtypeStruct((heads, 1, j), out_dtype),
        grid_spec=pltpu.PrefetchScalarGridSpec(
            num_scalar_prefetch=0,
            grid=grid,
            # slopes: grid-invariant index_map -> DMA'd once, stays resident.
            in_specs=[pl.BlockSpec((heads, 1), lambda b: (0, 0))],
            # output: (heads, 1, j) emitted directly; middle unit dim squeezed,
            # lane-dense multi-MiB tiles along j, double-buffered writeback.
            out_specs=pl.BlockSpec((heads, pl.Squeezed(), tj), lambda b: (0, 0, b)),
        ),
        compiler_params=pltpu.CompilerParams(
            dimension_semantics=("parallel",),
        ),
        cost_estimate=cost,
    )(slopes)


def alibi_bias_ref(heads: int, j: int) -> jax.Array:
    slopes = jnp.asarray(_get_slopes(heads), dtype=jnp.float32).reshape(heads, 1, 1)
    return jnp.arange(j, dtype=jnp.float32).reshape(1, 1, j) * slopes


if __name__ == "__main__":
    # Module has no tensor inputs; forward(i, j) depends only on (heads, i, j).
    # PRNGKey(0) only to satisfy the deterministic-input convention.
    _ = jax.random.PRNGKey(0)

    # Small, module-consistent case (j < 128 -> single full block).
    heads, i, j = 8, 8, 64
    bias = jax.block_until_ready(alibi_bias(heads, j))
    ref = alibi_bias_ref(heads, j)
    assert bias.shape == (heads, 1, j)
    assert bias.dtype == jnp.float32
    assert jnp.allclose(bias, ref, atol=1e-6, rtol=1e-6)

    # Larger case: non-power-of-2 heads (second slope branch), >= 2 lane-dense
    # j-tiles with a masked partial last tile.
    heads2, j2 = 12, 640
    bias2 = jax.block_until_ready(alibi_bias(heads2, j2))
    ref2 = alibi_bias_ref(heads2, j2)
    assert bias2.shape == (heads2, 1, j2)
    assert jnp.allclose(bias2, ref2, atol=1e-6, rtol=1e-6)

    print("KERNEL_OK")
</pallas_src>

<mosaic_0001>
module attributes {stable_mosaic.version = 11 : i64} {
  func.func @_alibi_kernel(%arg0: i32, %arg1: memref<8x1xf32, #tpu.memory_space<vmem>>, %arg2: memref<8x1x64xf32, #tpu.memory_space<vmem>>) attributes {dimension_semantics = [#tpu.dimension_semantics<parallel>], iteration_bounds = array<i64: 1>, scalar_prefetch = 0 : i64, scratch_operands = 0 : i64, tpu.core_type = #tpu.core_type<tc>, window_params = [{pipeline_mode = #tpu.pipeline_mode<synchronous>, transform_indices = @transform_0, window_bounds = array<i64: 8, 1>}, {transform_indices = @transform_1, window_bounds = array<i64: 8, 1, 64>}]} {
    %c64_i32 = arith.constant 64 : i32
    %0 = arith.muli %arg0, %c64_i32 : i32
    %1 = arith.sitofp %0 : i32 to f32
    %2 = tpu.iota {dimensions = array<i32: 1>} : vector<8x64xi32>
    %3 = arith.sitofp %2 : vector<8x64xi32> to vector<8x64xf32>
    %4 = vector.broadcast %1 : f32 to vector<8x64xf32>
    %5 = arith.addf %3, %4 : vector<8x64xf32>
    %c0 = arith.constant 0 : index
    %c0_0 = arith.constant 0 : index
    %6 = vector.load %arg1[%c0, %c0_0] : memref<8x1xf32, #tpu.memory_space<vmem>>, vector<8x1xf32>
    %7 = vector.broadcast %6 : vector<8x1xf32> to vector<8x64xf32>
    %8 = arith.mulf %7, %5 : vector<8x64xf32>
    %c0_1 = arith.constant 0 : index
    %c0_2 = arith.constant 0 : index
    %c0_3 = arith.constant 0 : index
    %9 = vector.load %arg2[%c0_1, %c0_2, %c0_3] : memref<8x1x64xf32, #tpu.memory_space<vmem>>, vector<8x1x64xf32>
    %10 = vector.shape_cast %9 : vector<8x1x64xf32> to vector<8x64xf32>
    %11 = vector.shape_cast %8 : vector<8x64xf32> to vector<8x1x64xf32>
    tpu.vector_store %arg2[%c0_1, %c0_2, %c0_3], %11 {strides = array<i32>} : memref<8x1x64xf32, #tpu.memory_space<vmem>>, vector<8x1x64xf32>,
    return
  }
  func.func @transform_0(%arg0: i32) -> (i32, i32) {
    %c0_i32 = arith.constant 0 : i32
    %c0_i32_0 = arith.constant 0 : i32
    %c0_i32_1 = arith.constant 0 : i32
    return %c0_i32, %c0_i32_0 : i32, i32
  }
  func.func @transform_1(%arg0: i32) -> (i32, i32, i32) {
    %c0_i32 = arith.constant 0 : i32
    %c0_i32_0 = arith.constant 0 : i32
    %c0_i32_1 = arith.constant 0 : i32
    return %c0_i32, %c0_i32_0, %arg0 : i32, i32, i32
  }
}

</mosaic_0001>

<bundles_post_ra>
// kernel: tpu_custom_call.1
= control target key start
LH: loop header
LB: loop body
LE: loop exit
PB: predicated region body
PF: predicated region fallthrough
CT: control target
= control target key end

     0   :  { %v134_v1 = vmov 0   ;;  %s163_s0 = inlined_call_operand.vmem [shape: f32[8,1], index: 0, kind: input, shape index: {}]   ;;  %s164_s1 = inlined_call_operand.hbm [shape: f32[8,1,64], index: 1, kind: output, shape index: {}]  }
   0x1   :  { %v16_v0 = vld [vmem:[%s163_s0] sm:$0xff]  ;;  %111 = vset.pattern.permute.xlu0 %v134_v1 }
   0x2   :  { %6 = vsyncpa [#allocation3], 0  ;;  %19 = vperm.xlu0 %111, %v16_v0   ;;  %v11_v2 = vlaneseq  ;;  %v135_v3 = vmov 1966171168   ;;  %vm81_vm0 = vcmask 516096   ;;  %s136_s0 = smov [#allocation2]  }
   0x3   :  { %v26_v4 = vunpack.c.l.s4 %v135_v3  ;;  %s95_s8 = sshll.u32 %s136_s0, 4  ;;  %s96_s8 = int_to_ptr.vmem [resolvable:$true] %s95_s8 }
   0x4   :  { %v12_v5 = vand.u32 127, %v11_v2  ;;  %v29_v7 = vshrl.u32 %v11_v2, 7  ;;  %s112_s9 = scalar_lea.vmem %s96_s8, 128  ;;  %p117_p1 = scmp.lt.s32.totalorder %s96_s8, %s96_s8 }
   0x5   :  { %v27_v6 = vunpack.c.0.s8 %v26_v4  ;;  %p113_p0 = scmp.ne.s32.totalorder %s96_s8, %s112_s9  ;;  %p118_p2 = scmp.lt.s32.totalorder %s112_s9, %s112_s9 }
   0x6   :  { %v13_v8 = vcvt.s32.f32 %v12_v5 }
   0x7   :  { %v30_v9 = vsub.s32 %v27_v6, %v29_v7  ;;  %p119_p3 = por %p118_p2, %p117_p1 }
   0x9   :  { %p120_p4 = pnand %p119_p3, %p113_p0 }
  0x7d   :  { %v20_v10 = vpop.permute.xlu0 %19 }
  0x7e   :  { %v22_v11 = vmul.f32 %v20_v10, %v13_v8 }
  0x80   :  { %v24_v12 = vcombine.high %v22_v11, %v22_v11  ;;  %v31_v13 = vrot.slane %v22_v11, %v30_v9 }
  0x82   :  { %v38_v14 = vrot.slane %v24_v12, %v30_v9  ;;  %v39_v15 = vcombine.high %v31_v13, %v31_v13  ;;  %v47_v16 = vrot.slane %v31_v13, %v30_v9 }
  0x84   :  { %v40_v17 = vcombine.high %v38_v14, %v38_v14  ;;  %v54_v18 = vrot.slane %v38_v14, %v30_v9  ;;  %v61_v19 = vrot.slane %v39_v15, %v30_v9  ;;  %v69_v20 = vcombine.high %v47_v16, %v47_v16  ;;  %82 = vst.msk [vmem:[#allocation2] sm:$0x1] %vm81_vm0, %v47_v16 }
  0x86   :  { %v68_v21 = vrot.slane %v40_v17, %v30_v9  ;;  %v70_v22 = vcombine.high %v54_v18, %v54_v18  ;;  %v71_v23 = vcombine.high %v61_v19, %v61_v19  ;;  %83 = vst.msk [vmem:[#allocation2 + $0x1] sm:$0x1] %vm81_vm0, %v61_v19  ;;  %84 = vst.msk [vmem:[#allocation2 + $0x2] sm:$0x1] %vm81_vm0, %v69_v20 }
  0x87   :  { %86 = vst.msk [vmem:[#allocation2 + $0x4] sm:$0x1] %vm81_vm0, %v54_v18 }
  0x88   :  { %v72_v24 = vcombine.high %v68_v21, %v68_v21  ;;  %85 = vst.msk [vmem:[#allocation2 + $0x3] sm:$0x1] %vm81_vm0, %v71_v23  ;;  %87 = vst.msk [vmem:[#allocation2 + $0x5] sm:$0x1] %vm81_vm0, %v68_v21 }
  0x89   :  { %88 = vst.msk [vmem:[#allocation2 + $0x6] sm:$0x1] %vm81_vm0, %v70_v22 }
  0x8a   :  { %89 = vst.msk [vmem:[#allocation2 + $0x7] sm:$0x1] %vm81_vm0, %v72_v24 }
  0x8b   :  { %123 = shalt.err (!%p120_p4)
}
  0x8c   :  { %s137_s10 = smov 16   ;;  %s138_s11 = smov 1  }
  0x8d   :  { %101 = dma.vmem_to_hbm [thread:$0]  %s96_s8, 128, %s164_s1, [#allocation3], %s137_s10, %s137_s10, %s138_s11  }
  0x8e   :  { %132 = dma.done.wait [#allocation3], 128  }
  0x8f   :  { %133 = vsyncadd [#allocation3], 4294967168 }
  0x90   :  { %105 = vsyncpa [#allocation3], 1 }

</bundles_post_ra>
